<compile_context>
chip_gen: v5e
topology: v5e:2x2
jax: 0.10.0
libtpu: 0.0.40
codegen_flags: <defaults>
</compile_context>

<pallas_src>
import jax
import jax.numpy as jnp
from jax.experimental import pallas as pl
from jax.experimental.pallas import tpu as pltpu


def _make_coupling_kernel(num_mid: int, half: int, compute_dtype):
    """Kernel body for a fixed (static) number of hidden layers.

    All operands are in transposed layout: (features, batch_tile).
    """

    def kernel(*refs):
        if num_mid > 0:
            (x1_ref, x2_ref, ld_ref,
             w_in_ref, b_in_ref,
             w_mid_ref, b_mid_ref,
             w_out_ref, b_out_ref,
             x2_out_ref, ld_out_ref) = refs
        else:
            (x1_ref, x2_ref, ld_ref,
             w_in_ref, b_in_ref,
             w_out_ref, b_out_ref,
             x2_out_ref, ld_out_ref) = refs

        # in_net: h = relu(W_in^T @ x1^T + b_in)  -> (mid, TILE_B), f32 accum
        h = jnp.dot(w_in_ref[...].astype(compute_dtype),
                    x1_ref[...].astype(compute_dtype),
                    preferred_element_type=jnp.float32)
        h = jnp.maximum(h + b_in_ref[...], 0.0)

        # mid_net: statically unrolled (num_mid is small and static)
        for i in range(num_mid):
            h = jnp.dot(w_mid_ref[i].astype(compute_dtype),
                        h.astype(compute_dtype),
                        preferred_element_type=jnp.float32)
            h = jnp.maximum(h + b_mid_ref[i], 0.0)

        # out_net. Rows were pre-permuted in the wrapper so that
        # out[:half, :] are the log_s rows (PyTorch cols ::2) and
        # out[half:, :] are the t rows (PyTorch cols 1::2).
        out = jnp.dot(w_out_ref[...].astype(compute_dtype),
                      h.astype(compute_dtype),
                      preferred_element_type=jnp.float32)
        out = out + b_out_ref[...]

        log_s = jnp.tanh(out[:half, :])          # (half, TILE_B) f32
        t = out[half:, :]                        # (half, TILE_B) f32

        # forward (reverse=False): x2' = x2 * exp(log_s) + t   (lane-dense)
        x2_out_ref[...] = (x2_ref[...] * jnp.exp(log_s) + t).astype(
            x2_out_ref.dtype)
        # log-det: lane-dense (1, TILE_B) row; reduce over the sublane axis
        ld_out_ref[...] = ld_ref[...] + jnp.sum(log_s, axis=0, keepdims=True)

    return kernel


class AffineCoupling:
    """JAX/Pallas port of the PyTorch AffineCoupling (forward, reverse=False)."""

    def __init__(self, in_out_dim, mid_dim, hidden, mask_config, key,
                 matmul_dtype=jnp.bfloat16, max_block_b=512):
        assert in_out_dim % 2 == 0
        assert hidden >= 1
        assert max_block_b % 128 == 0
        self.in_out_dim = in_out_dim
        self.mid_dim = mid_dim
        self.hidden = hidden
        self.num_mid = hidden - 1
        self.mask_config = mask_config
        self.matmul_dtype = matmul_dtype
        self.max_block_b = max_block_b
        half = in_out_dim // 2
        self.half = half

        keys = jax.random.split(key, 2 * (hidden + 1))
        scale = 0.1

        w_in = scale * jax.random.normal(keys[0], (half, mid_dim), jnp.float32)
        b_in = scale * jax.random.normal(keys[1], (mid_dim,), jnp.float32)
        w_mid, b_mid = [], []
        for i in range(hidden - 1):
            w_mid.append(scale * jax.random.normal(
                keys[2 + 2 * i], (mid_dim, mid_dim), jnp.float32))
            b_mid.append(scale * jax.random.normal(
                keys[3 + 2 * i], (mid_dim,), jnp.float32))
        w_out = scale * jax.random.normal(keys[-2], (mid_dim, in_out_dim), jnp.float32)
        b_out = scale * jax.random.normal(keys[-1], (in_out_dim,), jnp.float32)

        # f32 originals for the pure-JAX reference.
        self.w_in_raw, self.b_in_raw = w_in, b_in
        self.w_mid_raw, self.b_mid_raw = w_mid, b_mid
        self.w_out_raw, self.b_out_raw = w_out, b_out

        # Kernel layout: transposed weights; matmul operands in matmul_dtype,
        # biases kept in f32 (added to the f32 accumulator).
        self.w_in_t = jnp.asarray(w_in.T, matmul_dtype)            # (mid, half)
        self.b_in_t = b_in.reshape(mid_dim, 1)                     # (mid, 1) f32
        if self.num_mid > 0:
            self.w_mid_t = jnp.stack(
                [w.T for w in w_mid]).astype(matmul_dtype)          # (nm, mid, mid)
            self.b_mid_t = jnp.stack(
                [b.reshape(mid_dim, 1) for b in b_mid])             # (nm, mid, 1) f32
        else:
            self.w_mid_t = None
            self.b_mid_t = None
        # out_net rows pre-permuted: [:half] = log_s rows (out cols ::2),
        # [half:] = t rows (out cols 1::2).
        row_perm = jnp.concatenate([jnp.arange(0, in_out_dim, 2),
                                    jnp.arange(1, in_out_dim, 2)])
        self.w_out_t = jnp.asarray(w_out.T[row_perm], matmul_dtype)  # (D, mid)
        self.b_out_t = b_out[row_perm].reshape(in_out_dim, 1)        # (D, 1) f32

    # ------------------------------------------------------------------ #
    # Glue-free entry point: operates on already-split halves so chained
    # coupling layers never re-interleave between layers.
    # ------------------------------------------------------------------ #
    def forward_split(self, x1, x2, log_det_J):
        B, half = x1.shape
        assert half == self.half

        # Transposed layout: features on sublanes, batch on lanes.
        x1t = x1.T.astype(self.matmul_dtype)      # matmul operand
        x2t = x2.T.astype(jnp.float32)            # f32 elementwise-tail operand
        ldt = log_det_J.reshape(1, B).astype(jnp.float32)

        block_b = B if B <= self.max_block_b else self.max_block_b
        b_pad = ((B + block_b - 1) // block_b) * block_b
        if b_pad != B:
            pad = b_pad - B
            x1t = jnp.pad(x1t, ((0, 0), (0, pad)))
            x2t = jnp.pad(x2t, ((0, 0), (0, pad)))
            ldt = jnp.pad(ldt, ((0, 0), (0, pad)))
        grid_b = b_pad // block_b

        act_spec = pl.BlockSpec((half, block_b), lambda i: (0, i))
        ld_spec = pl.BlockSpec((1, block_b), lambda i: (0, i))

        def full(shape):
            # Weights: full block, constant index_map -> DMA'd once, resident.
            return pl.BlockSpec(shape, lambda i: (0,) * len(shape))

        args = [x1t, x2t, ldt, self.w_in_t, self.b_in_t]
        in_specs = [act_spec, act_spec, ld_spec,
                    full(self.w_in_t.shape), full(self.b_in_t.shape)]
        if self.num_mid > 0:
            args += [self.w_mid_t, self.b_mid_t]
            in_specs += [full(self.w_mid_t.shape), full(self.b_mid_t.shape)]
        args += [self.w_out_t, self.b_out_t]
        in_specs += [full(self.w_out_t.shape), full(self.b_out_t.shape)]

        kernel = _make_coupling_kernel(self.num_mid, half, self.matmul_dtype)

        x2nt, ldnt = pl.pallas_call(
            kernel,
            out_shape=(jax.ShapeDtypeStruct((half, b_pad), jnp.float32),
                       jax.ShapeDtypeStruct((1, b_pad), jnp.float32)),
            grid=(grid_b,),
            in_specs=in_specs,
            out_specs=(act_spec, ld_spec),
            compiler_params=pltpu.CompilerParams(
                dimension_semantics=("parallel",),
                vmem_limit_bytes=16 * 1024 * 1024),
        )(*args)

        x2_new = x2nt[:, :B].T.astype(x1.dtype)
        ld_new = ldnt[0, :B]
        return x2_new, ld_new

    # ------------------------------------------------------------------ #
    # PyTorch-compatible interleaved interface.
    # ------------------------------------------------------------------ #
    def __call__(self, x, log_det_J):
        B, D = x.shape
        if self.mask_config:
            x1, x2 = x[:, ::2], x[:, 1::2]
        else:
            x2, x1 = x[:, ::2], x[:, 1::2]

        x2_new, ld_new = self.forward_split(x1, x2, log_det_J)

        if self.mask_config:
            x_out = jnp.stack([x1, x2_new], axis=-1).reshape(B, D)
        else:
            x_out = jnp.stack([x2_new, x1], axis=-1).reshape(B, D)
        return x_out, ld_new

    # Pure-JAX reference (mirrors the PyTorch forward, reverse=False).
    def reference(self, x, log_det_J):
        if self.mask_config:
            x1, x2 = x[:, ::2], x[:, 1::2]
        else:
            x2, x1 = x[:, ::2], x[:, 1::2]
        h = jax.nn.relu(x1 @ self.w_in_raw + self.b_in_raw)
        for w, b in zip(self.w_mid_raw, self.b_mid_raw):
            h = jax.nn.relu(h @ w + b)
        out = h @ self.w_out_raw + self.b_out_raw
        log_s = jnp.tanh(out[:, ::2])
        t = out[:, 1::2]
        x2n = x2 * jnp.exp(log_s) + t
        ld = log_det_J + jnp.sum(log_s, axis=1)
        B, D = x.shape
        if self.mask_config:
            x_out = jnp.stack([x1, x2n], axis=-1).reshape(B, D)
        else:
            x_out = jnp.stack([x2n, x1], axis=-1).reshape(B, D)
        return x_out, ld


if __name__ == "__main__":
    key = jax.random.PRNGKey(0)
    k_param, k_x, k_ld, k_x2, k_ld2 = jax.random.split(key, 5)

    in_out_dim, mid_dim, hidden, mask_config = 16, 32, 3, 1

    # f32-matmul module (bit-tight check) and bf16-matmul module (perf path).
    mod_f32 = AffineCoupling(in_out_dim, mid_dim, hidden, mask_config, k_param,
                             matmul_dtype=jnp.float32)
    mod_bf16 = AffineCoupling(in_out_dim, mid_dim, hidden, mask_config, k_param,
                              matmul_dtype=jnp.bfloat16)

    # --- test 1: small batch, single grid step, f32 matmuls (tight tol) ---
    B = 8
    x = jax.random.normal(k_x, (B, in_out_dim), jnp.float32)
    log_det_J = jax.random.normal(k_ld, (B,), jnp.float32)

    x_out, ld_out = mod_f32(x, log_det_J)
    x_out = jax.block_until_ready(x_out)
    ld_out = jax.block_until_ready(ld_out)
    x_ref, ld_ref = mod_f32.reference(x, log_det_J)
    assert jnp.allclose(x_out, x_ref, atol=1e-4, rtol=1e-4), "x mismatch (f32)"
    assert jnp.allclose(ld_out, ld_ref, atol=1e-4, rtol=1e-4), "log_det mismatch (f32)"

    # --- test 2: larger batch -> padding + multi-step parallel grid, f32 ---
    B2 = 200
    mod_f32_tiled = AffineCoupling(in_out_dim, mid_dim, hidden, mask_config,
                                   k_param, matmul_dtype=jnp.float32,
                                   max_block_b=128)
    x_big = jax.random.normal(k_x2, (B2, in_out_dim), jnp.float32)
    ld_big = jax.random.normal(k_ld2, (B2,), jnp.float32)
    xo2, ldo2 = mod_f32_tiled(x_big, ld_big)
    xo2 = jax.block_until_ready(xo2)
    ldo2 = jax.block_until_ready(ldo2)
    xr2, ldr2 = mod_f32_tiled.reference(x_big, ld_big)
    assert jnp.allclose(xo2, xr2, atol=1e-4, rtol=1e-4), "x mismatch (tiled)"
    assert jnp.allclose(ldo2, ldr2, atol=1e-4, rtol=1e-4), "log_det mismatch (tiled)"

    # --- test 3: bf16-matmul fast path (f32 accumulate + f32 tail) ---
    xo3, ldo3 = mod_bf16(x, log_det_J)
    xo3 = jax.block_until_ready(xo3)
    ldo3 = jax.block_until_ready(ldo3)
    assert jnp.allclose(xo3, x_ref, atol=5e-2, rtol=5e-2), "x mismatch (bf16)"
    assert jnp.allclose(ldo3, ld_ref, atol=5e-2, rtol=5e-2), "log_det mismatch (bf16)"

    print("KERNEL_OK")
</pallas_src>

<mosaic_0001>
module attributes {stable_mosaic.version = 11 : i64} {
  func.func @kernel(%arg0: i32, %arg1: memref<8x8xf32, #tpu.memory_space<vmem>>, %arg2: memref<8x8xf32, #tpu.memory_space<vmem>>, %arg3: memref<1x8xf32, #tpu.memory_space<vmem>>, %arg4: memref<32x8xf32, #tpu.memory_space<vmem>>, %arg5: memref<32x1xf32, #tpu.memory_space<vmem>>, %arg6: memref<2x32x32xf32, #tpu.memory_space<vmem>>, %arg7: memref<2x32x1xf32, #tpu.memory_space<vmem>>, %arg8: memref<16x32xf32, #tpu.memory_space<vmem>>, %arg9: memref<16x1xf32, #tpu.memory_space<vmem>>, %arg10: memref<8x8xf32, #tpu.memory_space<vmem>>, %arg11: memref<1x8xf32, #tpu.memory_space<vmem>>) attributes {dimension_semantics = [#tpu.dimension_semantics<parallel>], iteration_bounds = array<i64: 1>, scalar_prefetch = 0 : i64, scratch_operands = 0 : i64, tpu.core_type = #tpu.core_type<tc>, window_params = [{transform_indices = @transform_0, window_bounds = array<i64: 8, 8>}, {transform_indices = @transform_1, window_bounds = array<i64: 8, 8>}, {transform_indices = @transform_2, window_bounds = array<i64: 1, 8>}, {pipeline_mode = #tpu.pipeline_mode<synchronous>, transform_indices = @transform_3, window_bounds = array<i64: 32, 8>}, {pipeline_mode = #tpu.pipeline_mode<synchronous>, transform_indices = @transform_4, window_bounds = array<i64: 32, 1>}, {pipeline_mode = #tpu.pipeline_mode<synchronous>, transform_indices = @transform_5, window_bounds = array<i64: 2, 32, 32>}, {pipeline_mode = #tpu.pipeline_mode<synchronous>, transform_indices = @transform_6, window_bounds = array<i64: 2, 32, 1>}, {pipeline_mode = #tpu.pipeline_mode<synchronous>, transform_indices = @transform_7, window_bounds = array<i64: 16, 32>}, {pipeline_mode = #tpu.pipeline_mode<synchronous>, transform_indices = @transform_8, window_bounds = array<i64: 16, 1>}, {transform_indices = @transform_9, window_bounds = array<i64: 8, 8>}, {transform_indices = @transform_10, window_bounds = array<i64: 1, 8>}]} {
    %c0 = arith.constant 0 : index
    %c0_0 = arith.constant 0 : index
    %0 = vector.load %arg4[%c0, %c0_0] : memref<32x8xf32, #tpu.memory_space<vmem>>, vector<32x8xf32>
    %c0_1 = arith.constant 0 : index
    %c0_2 = arith.constant 0 : index
    %1 = vector.load %arg1[%c0_1, %c0_2] : memref<8x8xf32, #tpu.memory_space<vmem>>, vector<8x8xf32>
    %cst = arith.constant dense<0.000000e+00> : vector<32x8xf32>
    %2 = tpu.matmul %0, %1, %cst {dimension_numbers = #tpu.dot_dimension_numbers<[1], [0], [0], [1], [0, 0, 1, 1], [], []>} : vector<32x8xf32>, vector<8x8xf32>, vector<32x8xf32> -> vector<32x8xf32>
    %c0_3 = arith.constant 0 : index
    %c0_4 = arith.constant 0 : index
    %3 = vector.load %arg5[%c0_3, %c0_4] : memref<32x1xf32, #tpu.memory_space<vmem>>, vector<32x1xf32>
    %4 = vector.broadcast %3 : vector<32x1xf32> to vector<32x8xf32>
    %5 = arith.addf %2, %4 : vector<32x8xf32>
    %cst_5 = arith.constant 0.000000e+00 : f32
    %6 = vector.broadcast %cst_5 : f32 to vector<32x8xf32>
    %7 = arith.maximumf %5, %6 : vector<32x8xf32>
    %c0_6 = arith.constant 0 : index
    %c0_7 = arith.constant 0 : index
    %c0_8 = arith.constant 0 : index
    %8 = vector.load %arg6[%c0_6, %c0_7, %c0_8] : memref<2x32x32xf32, #tpu.memory_space<vmem>>, vector<1x32x32xf32>
    %9 = vector.shape_cast %8 : vector<1x32x32xf32> to vector<32x32xf32>
    %cst_9 = arith.constant dense<0.000000e+00> : vector<32x8xf32>
    %10 = tpu.matmul %9, %7, %cst_9 {dimension_numbers = #tpu.dot_dimension_numbers<[1], [0], [0], [1], [0, 0, 1, 1], [], []>} : vector<32x32xf32>, vector<32x8xf32>, vector<32x8xf32> -> vector<32x8xf32>
    %c0_10 = arith.constant 0 : index
    %c0_11 = arith.constant 0 : index
    %c0_12 = arith.constant 0 : index
    %11 = vector.load %arg7[%c0_10, %c0_11, %c0_12] : memref<2x32x1xf32, #tpu.memory_space<vmem>>, vector<1x32x1xf32>
    %12 = vector.shape_cast %11 : vector<1x32x1xf32> to vector<32x1xf32>
    %13 = vector.broadcast %12 : vector<32x1xf32> to vector<32x8xf32>
    %14 = arith.addf %10, %13 : vector<32x8xf32>
    %cst_13 = arith.constant 0.000000e+00 : f32
    %15 = vector.broadcast %cst_13 : f32 to vector<32x8xf32>
    %16 = arith.maximumf %14, %15 : vector<32x8xf32>
    %c1 = arith.constant 1 : index
    %c0_14 = arith.constant 0 : index
    %c0_15 = arith.constant 0 : index
    %17 = vector.load %arg6[%c1, %c0_14, %c0_15] : memref<2x32x32xf32, #tpu.memory_space<vmem>>, vector<1x32x32xf32>
    %18 = vector.shape_cast %17 : vector<1x32x32xf32> to vector<32x32xf32>
    %cst_16 = arith.constant dense<0.000000e+00> : vector<32x8xf32>
    %19 = tpu.matmul %18, %16, %cst_16 {dimension_numbers = #tpu.dot_dimension_numbers<[1], [0], [0], [1], [0, 0, 1, 1], [], []>} : vector<32x32xf32>, vector<32x8xf32>, vector<32x8xf32> -> vector<32x8xf32>
    %c1_17 = arith.constant 1 : index
    %c0_18 = arith.constant 0 : index
    %c0_19 = arith.constant 0 : index
    %20 = vector.load %arg7[%c1_17, %c0_18, %c0_19] : memref<2x32x1xf32, #tpu.memory_space<vmem>>, vector<1x32x1xf32>
    %21 = vector.shape_cast %20 : vector<1x32x1xf32> to vector<32x1xf32>
    %22 = vector.broadcast %21 : vector<32x1xf32> to vector<32x8xf32>
    %23 = arith.addf %19, %22 : vector<32x8xf32>
    %cst_20 = arith.constant 0.000000e+00 : f32
    %24 = vector.broadcast %cst_20 : f32 to vector<32x8xf32>
    %25 = arith.maximumf %23, %24 : vector<32x8xf32>
    %c0_21 = arith.constant 0 : index
    %c0_22 = arith.constant 0 : index
    %26 = vector.load %arg8[%c0_21, %c0_22] : memref<16x32xf32, #tpu.memory_space<vmem>>, vector<16x32xf32>
    %cst_23 = arith.constant dense<0.000000e+00> : vector<16x8xf32>
    %27 = tpu.matmul %26, %25, %cst_23 {dimension_numbers = #tpu.dot_dimension_numbers<[1], [0], [0], [1], [0, 0, 1, 1], [], []>} : vector<16x32xf32>, vector<32x8xf32>, vector<16x8xf32> -> vector<16x8xf32>
    %c0_24 = arith.constant 0 : index
    %c0_25 = arith.constant 0 : index
    %28 = vector.load %arg9[%c0_24, %c0_25] : memref<16x1xf32, #tpu.memory_space<vmem>>, vector<16x1xf32>
    %29 = vector.broadcast %28 : vector<16x1xf32> to vector<16x8xf32>
    %30 = arith.addf %27, %29 : vector<16x8xf32>
    %31 = vector.extract_strided_slice %30 {offsets = [0, 0], sizes = [8, 8], strides = [1, 1]} : vector<16x8xf32> to vector<8x8xf32>
    %32 = math.tanh %31 : vector<8x8xf32>
    %33 = vector.extract_strided_slice %30 {offsets = [8, 0], sizes = [8, 8], strides = [1, 1]} : vector<16x8xf32> to vector<8x8xf32>
    %c0_26 = arith.constant 0 : index
    %c0_27 = arith.constant 0 : index
    %34 = vector.load %arg2[%c0_26, %c0_27] : memref<8x8xf32, #tpu.memory_space<vmem>>, vector<8x8xf32>
    %35 = math.exp %32 : vector<8x8xf32>
    %36 = arith.mulf %34, %35 : vector<8x8xf32>
    %37 = arith.addf %36, %33 : vector<8x8xf32>
    %c0_28 = arith.constant 0 : index
    %c0_29 = arith.constant 0 : index
    %38 = vector.load %arg10[%c0_28, %c0_29] : memref<8x8xf32, #tpu.memory_space<vmem>>, vector<8x8xf32>
    tpu.vector_store %arg10[%c0_28, %c0_29], %37 {strides = array<i32>} : memref<8x8xf32, #tpu.memory_space<vmem>>, vector<8x8xf32>,
    %c0_30 = arith.constant 0 : index
    %c0_31 = arith.constant 0 : index
    %39 = vector.load %arg3[%c0_30, %c0_31] : memref<1x8xf32, #tpu.memory_space<vmem>>, vector<1x8xf32>
    %cst_32 = arith.constant dense<0.000000e+00> : vector<8xf32>
    %40 = vector.multi_reduction <add>, %32, %cst_32 [0] : vector<8x8xf32> to vector<8xf32>
    %41 = vector.shape_cast %40 : vector<8xf32> to vector<1x8xf32>
    %42 = arith.addf %39, %41 : vector<1x8xf32>
    %c0_33 = arith.constant 0 : index
    %c0_34 = arith.constant 0 : index
    %43 = vector.load %arg11[%c0_33, %c0_34] : memref<1x8xf32, #tpu.memory_space<vmem>>, vector<1x8xf32>
    tpu.vector_store %arg11[%c0_33, %c0_34], %42 {strides = array<i32>} : memref<1x8xf32, #tpu.memory_space<vmem>>, vector<1x8xf32>,
    return
  }
  func.func @transform_0(%arg0: i32) -> (i32, i32) {
    %c0_i32 = arith.constant 0 : i32
    %c0_i32_0 = arith.constant 0 : i32
    return %c0_i32, %arg0 : i32, i32
  }
  func.func @transform_1(%arg0: i32) -> (i32, i32) {
    %c0_i32 = arith.constant 0 : i32
    %c0_i32_0 = arith.constant 0 : i32
    return %c0_i32, %arg0 : i32, i32
  }
  func.func @transform_2(%arg0: i32) -> (i32, i32) {
    %c0_i32 = arith.constant 0 : i32
    %c0_i32_0 = arith.constant 0 : i32
    return %c0_i32, %arg0 : i32, i32
  }
  func.func @transform_3(%arg0: i32) -> (i32, i32) {
    %c0_i32 = arith.constant 0 : i32
    %c0_i32_0 = arith.constant 0 : i32
    %c0_i32_1 = arith.constant 0 : i32
    return %c0_i32, %c0_i32_0 : i32, i32
  }
  func.func @transform_4(%arg0: i32) -> (i32, i32) {
    %c0_i32 = arith.constant 0 : i32
    %c0_i32_0 = arith.constant 0 : i32
    %c0_i32_1 = arith.constant 0 : i32
    return %c0_i32, %c0_i32_0 : i32, i32
  }
  func.func @transform_5(%arg0: i32) -> (i32, i32, i32) {
    %c0_i32 = arith.constant 0 : i32
    %c0_i32_0 = arith.constant 0 : i32
    %c0_i32_1 = arith.constant 0 : i32
    %c0_i32_2 = arith.constant 0 : i32
    return %c0_i32, %c0_i32_0, %c0_i32_1 : i32, i32, i32
  }
  func.func @transform_6(%arg0: i32) -> (i32, i32, i32) {
    %c0_i32 = arith.constant 0 : i32
    %c0_i32_0 = arith.constant 0 : i32
    %c0_i32_1 = arith.constant 0 : i32
    %c0_i32_2 = arith.constant 0 : i32
    return %c0_i32, %c0_i32_0, %c0_i32_1 : i32, i32, i32
  }
  func.func @transform_7(%arg0: i32) -> (i32, i32) {
    %c0_i32 = arith.constant 0 : i32
    %c0_i32_0 = arith.constant 0 : i32
    %c0_i32_1 = arith.constant 0 : i32
    return %c0_i32, %c0_i32_0 : i32, i32
  }
  func.func @transform_8(%arg0: i32) -> (i32, i32) {
    %c0_i32 = arith.constant 0 : i32
    %c0_i32_0 = arith.constant 0 : i32
    %c0_i32_1 = arith.constant 0 : i32
    return %c0_i32, %c0_i32_0 : i32, i32
  }
  func.func @transform_9(%arg0: i32) -> (i32, i32) {
    %c0_i32 = arith.constant 0 : i32
    %c0_i32_0 = arith.constant 0 : i32
    return %c0_i32, %arg0 : i32, i32
  }
  func.func @transform_10(%arg0: i32) -> (i32, i32) {
    %c0_i32 = arith.constant 0 : i32
    %c0_i32_0 = arith.constant 0 : i32
    return %c0_i32, %arg0 : i32, i32
  }
}

</mosaic_0001>

<bundles_post_ra>
// kernel: tpu_custom_call.1
= control target key start
LH: loop header
LB: loop body
LE: loop exit
PB: predicated region body
PF: predicated region fallthrough
CT: control target
= control target key end

     0   :  { %16 = vsyncpa [#allocation3], 0  ;;  %vm65_vm0 = vcmask 64512   ;;  %v437_v3 = vmov 0   ;;  %s610_s0 = inlined_call_operand.vmem [shape: f32[8,8], index: 0, kind: input, shape index: {}]   ;;  %s611_s1 = inlined_call_operand.vmem [shape: f32[8,8], index: 1, kind: input, shape index: {}]   ;;  %s612_s2 = inlined_call_operand.vmem [shape: f32[1,8], index: 2, kind: input, shape index: {}]   ;;  %s613_s3 = inlined_call_operand.vmem [shape: f32[32,8], index: 3, kind: input, shape index: {}]   ;;  %s614_s4 = inlined_call_operand.vmem [shape: f32[32,1], index: 4, kind: input, shape index: {}]   ;;  %s615_s5 = inlined_call_operand.vmem [shape: f32[2,32,32], index: 5, kind: input, shape index: {}]   ;;  %s616_s6 = inlined_call_operand.vmem [shape: f32[2,32,1], index: 6, kind: input, shape index: {}]   ;;  %s617_s7 = inlined_call_operand.vmem [shape: f32[16,32], index: 7, kind: input, shape index: {}]   ;;  %s618_s8 = inlined_call_operand.vmem [shape: f32[16,1], index: 8, kind: input, shape index: {}]   ;;  %s619_s9 = inlined_call_operand.hbm [shape: f32[8,8], index: 9, kind: output, shape index: {0}]   ;;  %s620_s10 = inlined_call_operand.hbm [shape: f32[1,8], index: 10, kind: output, shape index: {1}]  }
   0x1   :  { %v40_v0 = vld [vmem:[%s610_s0] sm:$0xff]  ;;  %v44_v1 = vld [vmem:[%s614_s4 + $0x18] sm:$0xff]  ;;  %378 = vset.pattern.permute.xlu0 %v437_v3  ;;  %v42_v4 = vld [vmem:[%s614_s4 + $0x8] sm:$0xff]  ;;  %379 = vset.pattern.permute.xlu1 %v437_v3 }
   0x2   :  { %v36_v2 = vld [vmem:[%s613_s3] sm:$0xff]  ;;  %93 = vmatpush.msra.mxu0 %v40_v0  ;;  %62 = vperm.xlu0 %378, %v44_v1  }
   0x3   :  { %353 = vmatmul.msk.f32.vlgmr.msra.gmra.mxu0 %vm65_vm0, %v36_v2  ;;  %52 = vperm.xlu1 %379, %v42_v4  }
   0x4   :  { %380 = vset.pattern.permute.xlu2 %v437_v3 }
   0x5   :  { %17 = vsyncpa [#allocation5], 0  ;;  %v43_v5 = vld [vmem:[%s614_s4 + $0x10] sm:$0xff]  ;;  %v37_v6 = vld [vmem:[%s613_s3 + $0x8] sm:$0xff]  ;;  %vm139_vm1 = vcmask 261120   ;;  %s328_s25 = sshll.u32 %s619_s9, 4  ;;  %s329_s25 = int_to_ptr.hbm [resolvable:$true] %s328_s25 }
   0x6   :  { %v41_v7 = vld [vmem:[%s614_s4] sm:$0xff]  ;;  %v116_v8 = vld [vmem:[%s616_s6 + $0x8] sm:$0xff]  ;;  %v38_v9 = vld [vmem:[%s613_s3 + $0x10] sm:$0xff]  ;;  %s439_s28 = smov [#allocation4]   ;;  %s339_s11 = sshll.u32 %s620_s10, 4  ;;  %vm319_vm2 = vcmask 57344   ;;  %s340_s11 = int_to_ptr.hbm [resolvable:$true] %s339_s11 }
   0x7   :  { %v115_v10 = vld [vmem:[%s616_s6] sm:$0xff]  ;;  %v367_v11 = vld [vmem:[%s616_s6 + $0x30] sm:$0xff]  ;;  %v39_v12 = vld [vmem:[%s613_s3 + $0x18] sm:$0xff]  ;;  %s337_s29 = sshll.u32 %s439_s28, 4  ;;  %s338_s29 = int_to_ptr.vmem [resolvable:$true] %s337_s29 }
   0x8   :  { %v366_v13 = vld [vmem:[%s616_s6 + $0x28] sm:$0xff]  ;;  %v262_v14 = vld [vmem:[%s618_s8] sm:$0xff]  ;;  %v118_v28 = vld [vmem:[%s616_s6 + $0x18] sm:$0xff] }
   0x9   :  { %v263_v15 = vld [vmem:[%s618_s8 + $0x8] sm:$0xff]  ;;  %136 = vperm.xlu2 %380, %v118_v28   ;;  %v111_v33 = vld [vmem:[%s615_s5] sm:$0xff]  ;;  %v117_v34 = vld [vmem:[%s616_s6 + $0x10] sm:$0xff] }
   0xa   :  { %57 = vperm.xlu0 %378, %v43_v5   ;;  %v112_v35 = vld [vmem:[%s615_s5 + $0x8] sm:$0xff]  ;;  %v368_v36 = vld [vmem:[%s616_s6 + $0x38] sm:$0xff]  ;;  %v113_v37 = vld [vmem:[%s615_s5 + $0x10] sm:$0xff] }
   0xb   :  { %354 = vmatmul.msk.f32.gmra.mxu0 %vm65_vm0, %v37_v6  ;;  %47 = vperm.xlu1 %379, %v41_v7   ;;  %v365_v38 = vld [vmem:[%s616_s6 + $0x20] sm:$0xff]  ;;  %v114_v39 = vld [vmem:[%s615_s5 + $0x18] sm:$0xff]  ;;  %v362_v57 = vld [vmem:[%s615_s5 + $0x28] sm:$0xff] }
   0xc   :  { %v361_v56 = vld [vmem:[%s615_s5 + $0x20] sm:$0xff]  ;;  %v363_v58 = vld [vmem:[%s615_s5 + $0x30] sm:$0xff]  ;;  %v364_v59 = vld [vmem:[%s615_s5 + $0x38] sm:$0xff] }
  0x11   :  { %131 = vperm.xlu2 %380, %v117_v34  }
  0x12   :  { %126 = vperm.xlu0 %378, %v116_v8  }
  0x13   :  { %355 = vmatmul.msk.f32.gmra.mxu0 %vm65_vm0, %v38_v9  ;;  %121 = vperm.xlu1 %379, %v115_v10  }
  0x19   :  { %212 = vperm.xlu2 %380, %v368_v36  }
  0x1a   :  { %207 = vperm.xlu0 %378, %v367_v11  }
  0x1b   :  { %356 = vmatmul.msk.f32.gmra.mxu0 %vm65_vm0, %v39_v12  ;;  %202 = vperm.xlu1 %379, %v366_v13   ;;  %v260_v12 = vld [vmem:[%s617_s7] sm:$0xff]  ;;  %v261_v13 = vld [vmem:[%s617_s7 + $0x8] sm:$0xff]  ;;  %s438_s7 = smov [#allocation2]  }
  0x1c   :  { %s326_s22 = sshll.u32 %s438_s7, 4  ;;  %s327_s22 = int_to_ptr.vmem [resolvable:$true] %s326_s22 }
  0x21   :  { %197 = vperm.xlu2 %380, %v365_v38  }
  0x22   :  { %266 = vperm.xlu0 %378, %v262_v14  }
  0x23   :  { %271 = vperm.xlu1 %379, %v263_v15  }
  0x63   :  { %v137_v42 = vpop.permute.xlu2 %136 }
  0x6b   :  { %v132_v44 = vpop.permute.xlu2 %131 }
  0x73   :  { %v213_v63 = vpop.permute.xlu2 %212 }
  0x74   :  { %v63_v18 = vpop.permute.xlu0 %62 }
  0x75   :  { %v53_v20 = vpop.permute.xlu1 %52 }
  0x7b   :  { %v198_v7 = vpop.permute.xlu2 %197 }
  0x7c   :  { %v58_v21 = vpop.permute.xlu0 %57 }
  0x7d   :  { %v48_v27 = vpop.permute.xlu1 %47 }
  0x80   :  { %v95_v16 = vpop.f32.mrf.mxu0 }
  0x81   :  { %v96_v29 = vadd.f32 %v95_v16, %v48_v27 }
  0x83   :  { %v107_v32 = vmax.f32 %v96_v29, 0.0 }
  0x84   :  { %v127_v48 = vpop.permute.xlu0 %126 }
  0x85   :  { %v122_v51 = vpop.permute.xlu1 %121 }
  0x88   :  { %v98_v17 = vpop.f32.mrf.mxu0 }
  0x89   :  { %v99_v25 = vadd.f32 %v98_v17, %v53_v20 }
  0x8b   :  { %v108_v31 = vmax.f32 %v99_v25, 0.0 }
  0x8c   :  { %v208_v0 = vpop.permute.xlu0 %207 }
  0x8d   :  { %v203_v4 = vpop.permute.xlu1 %202 }
  0x90   :  { %v101_v19 = vpop.f32.mrf.mxu0 }
  0x91   :  { %v102_v23 = vadd.f32 %v101_v19, %v58_v21 }
  0x93   :  { %v109_v30 = vmax.f32 %v102_v23, 0.0 }
  0x94   :  { %v267_v14 = vpop.permute.xlu0 %266 }
  0x95   :  { %v272_v27 = vpop.permute.xlu1 %271 }
  0x98   :  { %v104_v22 = vpop.f32.mrf.mxu0 }
  0x99   :  { %v105_v24 = vadd.f32 %v104_v22, %v63_v18 }
  0x9b   :  { %v110_v26 = vmax.f32 %v105_v24, 0.0  ;;  %v304_v24 = vld [vmem:[%s611_s1] sm:$0xff] }
  0x9d   :  { %164 = vmatpush.msra.mxu1 %v110_v26 }
  0x9f   :  { %165 = vmatpush.msra.mxu1 %v109_v30 }
  0xa1   :  { %166 = vmatpush.msra.mxu1 %v108_v31  ;;  %v310_v31 = vld [vmem:[%s612_s2] sm:$0x1] }
  0xa3   :  { %167 = vmatpush.msra.mxu1 %v107_v32 }
  0xa4   :  { %357 = vmatmul.msk.f32.vlgmr.msra.gmra.mxu1 %vm139_vm1, %v111_v33 }
  0xac   :  { %358 = vmatmul.msk.f32.gmra.mxu1 %vm139_vm1, %v112_v35 }
  0xb4   :  { %359 = vmatmul.msk.f32.gmra.mxu1 %vm139_vm1, %v113_v37 }
  0xbc   :  { %360 = vmatmul.msk.f32.gmra.mxu1 %vm139_vm1, %v114_v39 }
 0x121   :  { %v169_v40 = vpop.f32.mrf.mxu1 }
 0x122   :  { %v170_v52 = vadd.f32 %v169_v40, %v122_v51 }
 0x124   :  { %v181_v55 = vmax.f32 %v170_v52, 0.0 }
 0x129   :  { %v172_v41 = vpop.f32.mrf.mxu1 }
 0x12a   :  { %v173_v49 = vadd.f32 %v172_v41, %v127_v48 }
 0x12c   :  { %v182_v54 = vmax.f32 %v173_v49, 0.0 }
 0x131   :  { %v175_v43 = vpop.f32.mrf.mxu1 }
 0x132   :  { %v176_v46 = vadd.f32 %v175_v43, %v132_v44 }
 0x134   :  { %v183_v53 = vmax.f32 %v176_v46, 0.0 }
 0x139   :  { %v178_v45 = vpop.f32.mrf.mxu1 }
 0x13a   :  { %v179_v47 = vadd.f32 %v178_v45, %v137_v42 }
 0x13c   :  { %v184_v50 = vmax.f32 %v179_v47, 0.0 }
 0x13e   :  { %239 = vmatpush.msra.mxu2 %v184_v50 }
 0x140   :  { %240 = vmatpush.msra.mxu2 %v183_v53 }
 0x142   :  { %241 = vmatpush.msra.mxu2 %v182_v54 }
 0x144   :  { %242 = vmatpush.msra.mxu2 %v181_v55 }
 0x145   :  { %369 = vmatmul.msk.f32.vlgmr.msra.gmra.mxu2 %vm139_vm1, %v361_v56 }
 0x14d   :  { %370 = vmatmul.msk.f32.gmra.mxu2 %vm139_vm1, %v362_v57 }
 0x155   :  { %371 = vmatmul.msk.f32.gmra.mxu2 %vm139_vm1, %v363_v58 }
 0x15d   :  { %372 = vmatmul.msk.f32.gmra.mxu2 %vm139_vm1, %v364_v59 }
 0x1c8   :  { %v244_v60 = vpop.f32.mrf.mxu2 }
 0x1c9   :  { %v245_v8 = vadd.f32 %v244_v60, %v198_v7 }
 0x1cb   :  { %v256_v11 = vmax.f32 %v245_v8, 0.0 }
 0x1d0   :  { %v247_v61 = vpop.f32.mrf.mxu2 }
 0x1d1   :  { %v248_v5 = vadd.f32 %v247_v61, %v203_v4 }
 0x1d3   :  { %v257_v10 = vmax.f32 %v248_v5, 0.0 }
 0x1d8   :  { %v250_v62 = vpop.f32.mrf.mxu2 }
 0x1d9   :  { %v251_v2 = vadd.f32 %v250_v62, %v208_v0 }
 0x1db   :  { %v258_v9 = vmax.f32 %v251_v2, 0.0 }
 0x1e0   :  { %v253_v1 = vpop.f32.mrf.mxu2 }
 0x1e1   :  { %v254_v3 = vadd.f32 %v253_v1, %v213_v63 }
 0x1e3   :  { %v259_v6 = vmax.f32 %v254_v3, 0.0 }
 0x1e5   :  { %292 = vmatpush.msra.mxu3 %v259_v6 }
 0x1e7   :  { %293 = vmatpush.msra.mxu3 %v258_v9 }
 0x1e9   :  { %294 = vmatpush.msra.mxu3 %v257_v10 }
 0x1eb   :  { %295 = vmatpush.msra.mxu3 %v256_v11 }
 0x1ec   :  { %373 = vmatmul.msk.f32.vlgmr.msra.gmra.mxu3 %vm139_vm1, %v260_v12 }
 0x1f4   :  { %374 = vmatmul.msk.f32.gmra.mxu3 %vm139_vm1, %v261_v13 }
 0x26f   :  { %v297_v15 = vpop.f32.mrf.mxu3 }
 0x270   :  { %v298_v16 = vadd.f32 %v297_v15, %v267_v14 }
 0x272   :  { %381 = vtanh.f32 %v298_v16 }
 0x277   :  { %v300_v23 = vpop.f32.mrf.mxu3 }
 0x278   :  { %v382_v17 = vpop.eup %381  ;;  %v301_v28 = vadd.f32 %v300_v23, %v272_v27 }
 0x279   :  { %v305_v18 = vmul.f32 1.442695, %v382_v17  ;;  %v311_v19 = vsel %vm65_vm0, %v382_v17, 0.0 }
 0x27a   :  { %v312_v20 = vrot.slane %v311_v19, 4 }
 0x27b   :  { %383 = vpow2.f32 %v305_v18 }
 0x27c   :  { %v313_v21 = vadd.f32 %v312_v20, %v311_v19 }
 0x27e   :  { %v314_v22 = vrot.slane %v313_v21, 2 }
 0x280   :  { %v315_v25 = vadd.f32 %v314_v22, %v313_v21 }
 0x281   :  { %v384_v26 = vpop.eup %383 }
 0x282   :  { %v307_v29 = vmul.f32 %v384_v26, %v304_v24  ;;  %v316_v30 = vrot.slane %v315_v25, 1 }
 0x284   :  { %v308_v32 = vadd.f32 %v307_v29, %v301_v28  ;;  %v317_v33 = vadd.f32 %v316_v30, %v315_v25 }
 0x286   :  { %309 = vst.msk [vmem:[#allocation2] sm:$0xff] %vm65_vm0, %v308_v32  ;;  %v318_v34 = vadd.f32 %v317_v33, %v310_v31 }
 0x287   :  { %331 = dma.vmem_to_hbm [thread:$0]  %s327_s22, 128, %s329_s25, [#allocation3]  }
 0x288   :  { %320 = vst.msk [vmem:[#allocation4] sm:$0x1] %vm319_vm2, %v318_v34 }
 0x289   :  { %342 = dma.vmem_to_hbm [thread:$0]  %s338_s29, 16, %s340_s11, [#allocation5]  }
 0x28a   :  { %433 = dma.done.wait [#allocation3], 128  }
 0x28b   :  { %434 = vsyncadd [#allocation3], 4294967168 }
 0x28c   :  { %435 = dma.done.wait [#allocation5], 16  }
 0x28d   :  { %436 = vsyncadd [#allocation5], 4294967280 }
 0x28e   :  { %351 = vsyncpa [#allocation3], 1 }
 0x28f   :  { %352 = vsyncpa [#allocation5], 1 }

</bundles_post_ra>
